<compile_context>
chip_gen: v5e
topology: v5e:2x2
jax: 0.10.0
libtpu: 0.0.40
codegen_flags: <defaults>
</compile_context>

<pallas_src>
import jax
import jax.numpy as jnp
from jax.experimental import pallas as pl
from jax.experimental.pallas import tpu as pltpu


# --------------------------------------------------------------------------- #
# helpers
# --------------------------------------------------------------------------- #
def _cdiv(a, b):
    return -(-a // b)


def _round_up(a, b):
    return _cdiv(a, b) * b


def _physical_vmem_bytes():
    """Best-effort query of per-core VMEM; conservative fallback (v7x = 64 MiB)."""
    try:
        info = pltpu.get_tpu_info()
        v = getattr(info, "vmem_capacity_bytes", None)
        if v:
            return int(v)
    except Exception:
        pass
    return 64 << 20


# --------------------------------------------------------------------------- #
# kernel
# --------------------------------------------------------------------------- #
def make_residual_kernel(o: int, o_pad: int, i_dim: int, eps: float):
    """Kernel closed over static channel counts (o real, o_pad lane-padded)."""
    inv_o = 1.0 / float(o)
    n_pad = float(o_pad - o)

    def residual_kernel(x_ref, w_ref, p_ref, out_ref):
        x = x_ref[...]                         # (TB, I)      f32
        w = w_ref[...]                         # (I, O_PAD)   bf16 or f32, zero-padded cols
        bias = p_ref[0:1, :]                   # (1, O_PAD)   bias   (0 on pad)
        gamma = p_ref[1:2, :]                  # (1, O_PAD)   weight (0 on pad)
        beta = p_ref[2:3, :]                   # (1, O_PAD)   bias2  (0 on pad)

        # Linear on the MXU (low-precision inputs, f32 accumulation).
        y = jnp.dot(x.astype(w.dtype), w,
                    preferred_element_type=jnp.float32) + bias     # (TB, O_PAD)

        # GroupNorm(num_groups=1) over the real o channels, per row.
        # Pad columns of y are exactly 0 (zero weights + zero bias), so the row
        # sum over O_PAD equals the sum over o.
        mean = jnp.sum(y, axis=1, keepdims=True) * inv_o            # (TB, 1)
        centered = y - mean
        # Pad columns of `centered` are exactly -mean; remove their contribution
        # analytically instead of a full-tile mask multiply.
        var = (jnp.sum(centered * centered, axis=1, keepdims=True)
               - n_pad * (mean * mean)) * inv_o
        inv_std = jax.lax.rsqrt(var + eps)                          # (TB, 1), EUP

        # Fused affine + ReLU in one elementwise pass. gamma=beta=0 on the pad.
        act = jnp.maximum(centered * (inv_std * gamma) + beta, 0.0)

        # concat([act[:, :o], x], axis=1) written straight into the output tile
        # (x is already in VMEM for the matmul, so the copy is nearly free).
        out_ref[:, 0:o] = act[:, 0:o].astype(out_ref.dtype)
        out_ref[:, o:o + i_dim] = x.astype(out_ref.dtype)

    return residual_kernel


# --------------------------------------------------------------------------- #
# parameter prep (hoist to parameter-load time in real use)
# --------------------------------------------------------------------------- #
def prepare_params(w, b, gamma, beta, *, matmul_dtype=jnp.bfloat16):
    """Transpose + lane-pad the weight (in the MXU dtype) and fold the small
    per-channel vectors into one sublane-padded (8, O_PAD) f32 slab."""
    o, i = w.shape
    o_pad = _round_up(o, 128)

    w_t = jnp.zeros((i, o_pad), matmul_dtype)
    w_t = w_t.at[:, :o].set(jnp.asarray(w, jnp.float32).T.astype(matmul_dtype))

    params = jnp.zeros((8, o_pad), jnp.float32)       # 8 rows: free sublane padding
    params = params.at[0, :o].set(jnp.asarray(b, jnp.float32))
    params = params.at[1, :o].set(jnp.asarray(gamma, jnp.float32))
    params = params.at[2, :o].set(jnp.asarray(beta, jnp.float32))
    return w_t, params


# --------------------------------------------------------------------------- #
# pallas_call wrapper
# --------------------------------------------------------------------------- #
def residual_apply(x, w_t, params, o, *, eps=1e-5, block_b=None,
                   single_buffer_resident=True):
    """x: (B, I) f32; w_t: (I, O_PAD); params: (8, O_PAD); o = real out channels.
    Returns (B, o + I) = concat([relu(groupnorm(linear(x))), x], axis=1)."""
    B, I = x.shape
    o_pad = w_t.shape[1]
    out_w = o + I

    phys_vmem = _physical_vmem_bytes()
    vmem_cap = int(phys_vmem * 0.80)          # headroom for Mosaic scratch / semaphores
    if block_b is None:
        block_b = 1024 if phys_vmem >= (100 << 20) else 512

    # Batch tile: big enough to amortize per-step overhead, at least 2 grid
    # steps so both TensorCores get work on dual-core chips, shrunk to fit VMEM.
    if B <= 16:
        TB = B
    else:
        TB = max(8, min(block_b, _round_up(_cdiv(B, 2), 8)))

    wb = w_t.dtype.itemsize
    n_buf = 1 if single_buffer_resident else 2

    def vmem_need(tb):
        return (2 * tb * I * 4                       # pipelined x tiles
                + 2 * tb * out_w * 4                 # pipelined out tiles
                + n_buf * (I * o_pad * wb + 8 * o_pad * 4)   # resident weight + params
                + 3 * tb * o_pad * 4)                # f32 intermediates (y/centered/act)

    while TB > 8 and vmem_need(TB) + (4 << 20) > vmem_cap:
        TB = max(8, _round_up(TB // 2, 8))
    # TODO(synk): if the resident (I, O_PAD) weight alone exceeds the VMEM budget,
    # add a K-tiled grid axis with an f32 accumulator scratch (epilogue on last K).

    vmem_limit = int(max(16 << 20, min(vmem_need(TB) + (4 << 20), vmem_cap)))
    grid = (_cdiv(B, TB),)

    kernel = make_residual_kernel(o, o_pad, I, eps)

    # Constant-index residents: request single buffering when supported.
    resident_kwargs = {}
    if single_buffer_resident:
        resident_kwargs = dict(pipeline_mode=pl.Buffered(1))

    return pl.pallas_call(
        kernel,
        out_shape=jax.ShapeDtypeStruct((B, out_w), x.dtype),
        grid=grid,
        in_specs=[
            pl.BlockSpec((TB, I), lambda bi: (bi, 0)),                       # x tile
            pl.BlockSpec((I, o_pad), lambda bi: (0, 0), **resident_kwargs),  # weight
            pl.BlockSpec((8, o_pad), lambda bi: (0, 0), **resident_kwargs),  # param slab
        ],
        out_specs=pl.BlockSpec((TB, out_w), lambda bi: (bi, 0)),
        compiler_params=pltpu.CompilerParams(
            dimension_semantics=("parallel",),
            vmem_limit_bytes=vmem_limit,
        ),
    )(x, w_t, params)


def residual_forward(x, w, b, gamma, beta, *, eps=1e-5, use_bf16=True, block_b=None):
    """End-to-end entry point matching the PyTorch Residual.forward."""
    o = w.shape[0]
    mm_dtype = jnp.bfloat16 if use_bf16 else jnp.float32
    w_t, params = prepare_params(w, b, gamma, beta, matmul_dtype=mm_dtype)
    try:
        return residual_apply(x, w_t, params, o, eps=eps, block_b=block_b,
                              single_buffer_resident=True)
    except Exception:
        # Older builds may reject pl.Buffered(1) on a pallas_call input spec;
        # fall back to the default double-buffered residents.
        return residual_apply(x, w_t, params, o, eps=eps, block_b=block_b,
                              single_buffer_resident=False)


def residual_reference(x, w, b, gamma, beta, eps=1e-5):
    y = x @ w.T + b
    mean = jnp.mean(y, axis=1, keepdims=True)
    var = jnp.mean((y - mean) ** 2, axis=1, keepdims=True)
    y_hat = (y - mean) / jnp.sqrt(var + eps)
    y_hat = y_hat * gamma + beta
    out = jnp.maximum(y_hat, 0.0)
    return jnp.concatenate([out, x], axis=1)


# --------------------------------------------------------------------------- #
# demo / self-test
# --------------------------------------------------------------------------- #
if __name__ == "__main__":
    # Small shapes consistent with the module: Residual(i=32, o=64), batch=8.
    B, I, O = 8, 32, 64

    key = jax.random.PRNGKey(0)
    kx, kw, kb = jax.random.split(key, 3)

    x = jax.random.normal(kx, (B, I), dtype=jnp.float32)

    # Deterministic parameter init (PyTorch-Linear-style uniform bounds).
    bound = 1.0 / (I ** 0.5)
    w = jax.random.uniform(kw, (O, I), jnp.float32, -bound, bound)
    b = jax.random.uniform(kb, (O,), jnp.float32, -bound, bound)
    gamma = jnp.ones((O,), jnp.float32)    # GroupNorm weight init
    beta = jnp.zeros((O,), jnp.float32)    # GroupNorm bias init

    ref = residual_reference(x, w, b, gamma, beta)

    # f32 matmul path: tight tolerance.
    out_f32 = jax.block_until_ready(
        residual_forward(x, w, b, gamma, beta, use_bf16=False))
    assert out_f32.shape == (B, O + I)
    assert jnp.allclose(out_f32, ref, atol=1e-4, rtol=1e-4), "f32 path mismatch"

    # bf16 matmul path (f32 accumulation): looser tolerance gate.
    out_bf16 = jax.block_until_ready(
        residual_forward(x, w, b, gamma, beta, use_bf16=True))
    assert out_bf16.shape == (B, O + I)
    assert jnp.allclose(out_bf16, ref, atol=5e-2, rtol=5e-2), "bf16 path mismatch"
    # The concat's x half must be an exact copy in both paths.
    assert jnp.array_equal(out_f32[:, O:], x)
    assert jnp.array_equal(out_bf16[:, O:], x)

    # Larger batch: exercises grid > 1 (both TensorCores on dual-core chips).
    B2 = 256
    x2 = jax.random.normal(jax.random.PRNGKey(1), (B2, I), dtype=jnp.float32)
    out2 = jax.block_until_ready(
        residual_forward(x2, w, b, gamma, beta, use_bf16=True))
    ref2 = residual_reference(x2, w, b, gamma, beta)
    assert out2.shape == (B2, O + I)
    assert jnp.allclose(out2, ref2, atol=5e-2, rtol=5e-2), "batched bf16 mismatch"

    print("KERNEL_OK")
</pallas_src>

<mosaic_0001>
module attributes {stable_mosaic.version = 11 : i64} {
  func.func @residual_kernel(%arg0: i32, %arg1: memref<8x32xf32, #tpu.memory_space<vmem>>, %arg2: memref<32x128xf32, #tpu.memory_space<vmem>>, %arg3: memref<8x128xf32, #tpu.memory_space<vmem>>, %arg4: memref<8x96xf32, #tpu.memory_space<vmem>>) attributes {dimension_semantics = [#tpu.dimension_semantics<parallel>], iteration_bounds = array<i64: 1>, scalar_prefetch = 0 : i64, scratch_operands = 0 : i64, tpu.core_type = #tpu.core_type<tc>, window_params = [{transform_indices = @transform_0, window_bounds = array<i64: 8, 32>}, {pipeline_mode = #tpu.pipeline_mode<synchronous>, transform_indices = @transform_1, window_bounds = array<i64: 32, 128>}, {pipeline_mode = #tpu.pipeline_mode<synchronous>, transform_indices = @transform_2, window_bounds = array<i64: 8, 128>}, {transform_indices = @transform_3, window_bounds = array<i64: 8, 96>}]} {
    %c0 = arith.constant 0 : index
    %c0_0 = arith.constant 0 : index
    %0 = vector.load %arg1[%c0, %c0_0] : memref<8x32xf32, #tpu.memory_space<vmem>>, vector<8x32xf32>
    %c0_1 = arith.constant 0 : index
    %c0_2 = arith.constant 0 : index
    %1 = vector.load %arg2[%c0_1, %c0_2] : memref<32x128xf32, #tpu.memory_space<vmem>>, vector<32x128xf32>
    %c0_3 = arith.constant 0 : index
    %c0_4 = arith.constant 0 : index
    %2 = vector.load %arg3[%c0_3, %c0_4] : memref<8x128xf32, #tpu.memory_space<vmem>>, vector<1x128xf32>
    %c1 = arith.constant 1 : index
    %c0_5 = arith.constant 0 : index
    %3 = vector.load %arg3[%c1, %c0_5] : memref<8x128xf32, #tpu.memory_space<vmem>>, vector<1x128xf32>
    %c2 = arith.constant 2 : index
    %c0_6 = arith.constant 0 : index
    %4 = vector.load %arg3[%c2, %c0_6] : memref<8x128xf32, #tpu.memory_space<vmem>>, vector<1x128xf32>
    %cst = arith.constant dense<0.000000e+00> : vector<8x128xf32>
    %5 = tpu.matmul %0, %1, %cst {dimension_numbers = #tpu.dot_dimension_numbers<[1], [0], [0], [1], [0, 0, 1, 1], [], []>} : vector<8x32xf32>, vector<32x128xf32>, vector<8x128xf32> -> vector<8x128xf32>
    %6 = vector.broadcast %2 : vector<1x128xf32> to vector<8x128xf32>
    %7 = arith.addf %5, %6 : vector<8x128xf32>
    %cst_7 = arith.constant dense<0.000000e+00> : vector<8xf32>
    %8 = vector.multi_reduction <add>, %7, %cst_7 [1] : vector<8x128xf32> to vector<8xf32>
    %9 = vector.shape_cast %8 : vector<8xf32> to vector<8x1xf32>
    %cst_8 = arith.constant 1.562500e-02 : f32
    %10 = vector.broadcast %cst_8 : f32 to vector<8x1xf32>
    %11 = arith.mulf %9, %10 : vector<8x1xf32>
    %12 = vector.broadcast %11 : vector<8x1xf32> to vector<8x128xf32>
    %13 = arith.subf %7, %12 : vector<8x128xf32>
    %14 = arith.mulf %13, %13 : vector<8x128xf32>
    %cst_9 = arith.constant dense<0.000000e+00> : vector<8xf32>
    %15 = vector.multi_reduction <add>, %14, %cst_9 [1] : vector<8x128xf32> to vector<8xf32>
    %16 = vector.shape_cast %15 : vector<8xf32> to vector<8x1xf32>
    %17 = arith.mulf %11, %11 : vector<8x1xf32>
    %cst_10 = arith.constant 6.400000e+01 : f32
    %18 = vector.broadcast %cst_10 : f32 to vector<8x1xf32>
    %19 = arith.mulf %18, %17 : vector<8x1xf32>
    %20 = arith.subf %16, %19 : vector<8x1xf32>
    %cst_11 = arith.constant 1.562500e-02 : f32
    %21 = vector.broadcast %cst_11 : f32 to vector<8x1xf32>
    %22 = arith.mulf %20, %21 : vector<8x1xf32>
    %cst_12 = arith.constant 9.99999974E-6 : f32
    %23 = vector.broadcast %cst_12 : f32 to vector<8x1xf32>
    %24 = arith.addf %22, %23 : vector<8x1xf32>
    %25 = math.rsqrt %24 : vector<8x1xf32>
    %26 = vector.broadcast %25 : vector<8x1xf32> to vector<8x128xf32>
    %27 = vector.broadcast %3 : vector<1x128xf32> to vector<8x128xf32>
    %28 = arith.mulf %26, %27 : vector<8x128xf32>
    %29 = arith.mulf %13, %28 : vector<8x128xf32>
    %30 = vector.broadcast %4 : vector<1x128xf32> to vector<8x128xf32>
    %31 = arith.addf %29, %30 : vector<8x128xf32>
    %cst_13 = arith.constant 0.000000e+00 : f32
    %32 = vector.broadcast %cst_13 : f32 to vector<8x128xf32>
    %33 = arith.maximumf %31, %32 : vector<8x128xf32>
    %34 = vector.extract_strided_slice %33 {offsets = [0, 0], sizes = [8, 64], strides = [1, 1]} : vector<8x128xf32> to vector<8x64xf32>
    %c0_14 = arith.constant 0 : index
    %c0_15 = arith.constant 0 : index
    %35 = vector.load %arg4[%c0_14, %c0_15] : memref<8x96xf32, #tpu.memory_space<vmem>>, vector<8x64xf32>
    tpu.vector_store %arg4[%c0_14, %c0_15], %34 {strides = array<i32>} : memref<8x96xf32, #tpu.memory_space<vmem>>, vector<8x64xf32>,
    %c0_16 = arith.constant 0 : index
    %c64 = arith.constant 64 : index
    %36 = vector.load %arg4[%c0_16, %c64] : memref<8x96xf32, #tpu.memory_space<vmem>>, vector<8x32xf32>
    tpu.vector_store %arg4[%c0_16, %c64], %0 {strides = array<i32>} : memref<8x96xf32, #tpu.memory_space<vmem>>, vector<8x32xf32>,
    return
  }
  func.func @transform_0(%arg0: i32) -> (i32, i32) {
    %c0_i32 = arith.constant 0 : i32
    %c0_i32_0 = arith.constant 0 : i32
    return %arg0, %c0_i32 : i32, i32
  }
  func.func @transform_1(%arg0: i32) -> (i32, i32) {
    %c0_i32 = arith.constant 0 : i32
    %c0_i32_0 = arith.constant 0 : i32
    %c0_i32_1 = arith.constant 0 : i32
    return %c0_i32, %c0_i32_0 : i32, i32
  }
  func.func @transform_2(%arg0: i32) -> (i32, i32) {
    %c0_i32 = arith.constant 0 : i32
    %c0_i32_0 = arith.constant 0 : i32
    %c0_i32_1 = arith.constant 0 : i32
    return %c0_i32, %c0_i32_0 : i32, i32
  }
  func.func @transform_3(%arg0: i32) -> (i32, i32) {
    %c0_i32 = arith.constant 0 : i32
    %c0_i32_0 = arith.constant 0 : i32
    return %arg0, %c0_i32 : i32, i32
  }
}

module attributes {stable_mosaic.version = 11 : i64} {
  func.func @residual_kernel(%arg0: i32, %arg1: memref<8x32xf32, #tpu.memory_space<vmem>>, %arg2: memref<32x128xf32, #tpu.memory_space<vmem>>, %arg3: memref<8x128xf32, #tpu.memory_space<vmem>>, %arg4: memref<8x96xf32, #tpu.memory_space<vmem>>) attributes {dimension_semantics = [#tpu.dimension_semantics<parallel>], iteration_bounds = array<i64: 1>, scalar_prefetch = 0 : i64, scratch_operands = 0 : i64, tpu.core_type = #tpu.core_type<tc>, window_params = [{transform_indices = @transform_0, window_bounds = array<i64: 8, 32>}, {pipeline_mode = #tpu.pipeline_mode<synchronous>, transform_indices = @transform_1, window_bounds = array<i64: 32, 128>}, {pipeline_mode = #tpu.pipeline_mode<synchronous>, transform_indices = @transform_2, window_bounds = array<i64: 8, 128>}, {transform_indices = @transform_3, window_bounds = array<i64: 8, 96>}]} {
    %c0 = arith.constant 0 : index
    %c0_0 = arith.constant 0 : index
    %0 = vector.load %arg1[%c0, %c0_0] : memref<8x32xf32, #tpu.memory_space<vmem>>, vector<8x32xf32>
    %c0_1 = arith.constant 0 : index
    %c0_2 = arith.constant 0 : index
    %1 = vector.load %arg2[%c0_1, %c0_2] : memref<32x128xf32, #tpu.memory_space<vmem>>, vector<32x128xf32>
    %c0_3 = arith.constant 0 : index
    %c0_4 = arith.constant 0 : index
    %2 = vector.load %arg3[%c0_3, %c0_4] : memref<8x128xf32, #tpu.memory_space<vmem>>, vector<1x128xf32>
    %c1 = arith.constant 1 : index
    %c0_5 = arith.constant 0 : index
    %3 = vector.load %arg3[%c1, %c0_5] : memref<8x128xf32, #tpu.memory_space<vmem>>, vector<1x128xf32>
    %c2 = arith.constant 2 : index
    %c0_6 = arith.constant 0 : index
    %4 = vector.load %arg3[%c2, %c0_6] : memref<8x128xf32, #tpu.memory_space<vmem>>, vector<1x128xf32>
    %cst = arith.constant dense<0.000000e+00> : vector<8x128xf32>
    %5 = tpu.matmul %0, %1, %cst {dimension_numbers = #tpu.dot_dimension_numbers<[1], [0], [0], [1], [0, 0, 1, 1], [], []>} : vector<8x32xf32>, vector<32x128xf32>, vector<8x128xf32> -> vector<8x128xf32>
    %6 = vector.broadcast %2 : vector<1x128xf32> to vector<8x128xf32>
    %7 = arith.addf %5, %6 : vector<8x128xf32>
    %cst_7 = arith.constant dense<0.000000e+00> : vector<8xf32>
    %8 = vector.multi_reduction <add>, %7, %cst_7 [1] : vector<8x128xf32> to vector<8xf32>
    %9 = vector.shape_cast %8 : vector<8xf32> to vector<8x1xf32>
    %cst_8 = arith.constant 1.562500e-02 : f32
    %10 = vector.broadcast %cst_8 : f32 to vector<8x1xf32>
    %11 = arith.mulf %9, %10 : vector<8x1xf32>
    %12 = vector.broadcast %11 : vector<8x1xf32> to vector<8x128xf32>
    %13 = arith.subf %7, %12 : vector<8x128xf32>
    %14 = arith.mulf %13, %13 : vector<8x128xf32>
    %cst_9 = arith.constant dense<0.000000e+00> : vector<8xf32>
    %15 = vector.multi_reduction <add>, %14, %cst_9 [1] : vector<8x128xf32> to vector<8xf32>
    %16 = vector.shape_cast %15 : vector<8xf32> to vector<8x1xf32>
    %17 = arith.mulf %11, %11 : vector<8x1xf32>
    %cst_10 = arith.constant 6.400000e+01 : f32
    %18 = vector.broadcast %cst_10 : f32 to vector<8x1xf32>
    %19 = arith.mulf %18, %17 : vector<8x1xf32>
    %20 = arith.subf %16, %19 : vector<8x1xf32>
    %cst_11 = arith.constant 1.562500e-02 : f32
    %21 = vector.broadcast %cst_11 : f32 to vector<8x1xf32>
    %22 = arith.mulf %20, %21 : vector<8x1xf32>
    %cst_12 = arith.constant 9.99999974E-6 : f32
    %23 = vector.broadcast %cst_12 : f32 to vector<8x1xf32>
    %24 = arith.addf %22, %23 : vector<8x1xf32>
    %25 = math.rsqrt %24 : vector<8x1xf32>
    %26 = vector.broadcast %25 : vector<8x1xf32> to vector<8x128xf32>
    %27 = vector.broadcast %3 : vector<1x128xf32> to vector<8x128xf32>
    %28 = arith.mulf %26, %27 : vector<8x128xf32>
    %29 = arith.mulf %13, %28 : vector<8x128xf32>
    %30 = vector.broadcast %4 : vector<1x128xf32> to vector<8x128xf32>
    %31 = arith.addf %29, %30 : vector<8x128xf32>
    %cst_13 = arith.constant 0.000000e+00 : f32
    %32 = vector.broadcast %cst_13 : f32 to vector<8x128xf32>
    %33 = arith.maximumf %31, %32 : vector<8x128xf32>
    %34 = vector.extract_strided_slice %33 {offsets = [0, 0], sizes = [8, 64], strides = [1, 1]} : vector<8x128xf32> to vector<8x64xf32>
    %c0_14 = arith.constant 0 : index
    %c0_15 = arith.constant 0 : index
    %35 = vector.load %arg4[%c0_14, %c0_15] : memref<8x96xf32, #tpu.memory_space<vmem>>, vector<8x64xf32>
    tpu.vector_store %arg4[%c0_14, %c0_15], %34 {strides = array<i32>} : memref<8x96xf32, #tpu.memory_space<vmem>>, vector<8x64xf32>,
    %c0_16 = arith.constant 0 : index
    %c64 = arith.constant 64 : index
    %36 = vector.load %arg4[%c0_16, %c64] : memref<8x96xf32, #tpu.memory_space<vmem>>, vector<8x32xf32>
    tpu.vector_store %arg4[%c0_16, %c64], %0 {strides = array<i32>} : memref<8x96xf32, #tpu.memory_space<vmem>>, vector<8x32xf32>,
    return
  }
  func.func @transform_0(%arg0: i32) -> (i32, i32) {
    %c0_i32 = arith.constant 0 : i32
    %c0_i32_0 = arith.constant 0 : i32
    return %arg0, %c0_i32 : i32, i32
  }
  func.func @transform_1(%arg0: i32) -> (i32, i32) {
    %c0_i32 = arith.constant 0 : i32
    %c0_i32_0 = arith.constant 0 : i32
    %c0_i32_1 = arith.constant 0 : i32
    return %c0_i32, %c0_i32_0 : i32, i32
  }
  func.func @transform_2(%arg0: i32) -> (i32, i32) {
    %c0_i32 = arith.constant 0 : i32
    %c0_i32_0 = arith.constant 0 : i32
    %c0_i32_1 = arith.constant 0 : i32
    return %c0_i32, %c0_i32_0 : i32, i32
  }
  func.func @transform_3(%arg0: i32) -> (i32, i32) {
    %c0_i32 = arith.constant 0 : i32
    %c0_i32_0 = arith.constant 0 : i32
    return %arg0, %c0_i32 : i32, i32
  }
}

</mosaic_0001>

<bundles_post_ra>
// kernel: tpu_custom_call.1
= control target key start
LH: loop header
LB: loop body
LE: loop exit
PB: predicated region body
PF: predicated region fallthrough
CT: control target
= control target key end

     0   :  { %8 = vsyncpa [#allocation3], 0  ;;  %s298_s0 = inlined_call_operand.hbm [shape: f32[8,32], index: 0, kind: input, shape index: {}]   ;;  %s299_s1 = inlined_call_operand.hbm [shape: f32[32,128], index: 1, kind: input, shape index: {}]   ;;  %s300_s2 = inlined_call_operand.hbm [shape: f32[8,128], index: 2, kind: input, shape index: {}]   ;;  %s301_s3 = inlined_call_operand.hbm [shape: f32[8,96], index: 3, kind: output, shape index: {}]  }
   0x1   :  { %9 = vsyncpa [#allocation6], 0  ;;  %s26_s14 = sshll.u32 %s299_s1, 4  ;;  %s27_s14 = int_to_ptr.hbm [resolvable:$true] %s26_s14 }
   0x2   :  { %10 = vsyncpa [#allocation4], 0  ;;  %s259_s15 = smov [#allocation5]   ;;  %s16_s19 = sshll.u32 %s298_s0, 4  ;;  %s17_s19 = int_to_ptr.hbm [resolvable:$true] %s16_s19 }
   0x3   :  { %s28_s16 = sshll.u32 %s259_s15, 4  ;;  %s260_s20 = smov 128   ;;  %s29_s16 = int_to_ptr.vmem [resolvable:$true] %s28_s16 }
   0x4   :  { %s261_s21 = smov 8   ;;  %s262_s22 = smov [#allocation2]  }
   0x5   :  { %34 = dma.hbm_to_vmem [thread:$0]  %s27_s14, 512, %s29_s16, [#allocation6], %s260_s20, %s260_s20, %s261_s21  }
   0x6   :  { %s18_s23 = sshll.u32 %s262_s22, 4  ;;  %s40_s26 = sshll.u32 %s300_s2, 4  ;;  %s19_s23 = int_to_ptr.vmem [resolvable:$true] %s18_s23  ;;  %s41_s26 = int_to_ptr.hbm [resolvable:$true] %s40_s26 }
   0x7   :  { %21 = dma.hbm_to_vmem [thread:$0]  %s17_s19, 128, %s19_s23, [#allocation3]  }
   0x8   :  { %s263_s1 = smov [#allocation7]  }
   0x9   :  { %s42_s27 = sshll.u32 %s263_s1, 4  ;;  %s43_s27 = int_to_ptr.vmem [resolvable:$true] %s42_s27 }
   0xa   :  { %45 = dma.hbm_to_vmem [thread:$0]  %s41_s26, 128, %s43_s27, [#allocation6]  }
   0xb   :  { %253 = dma.done.wait [#allocation3], 128  }
   0xc   :  { %254 = vsyncadd [#allocation3], 4294967168 }
   0xd   :  { %255 = dma.done.wait [#allocation6], 640  }
   0xe   :  { %256 = vsyncadd [#allocation6], 4294966656  ;;  %v62_v0 = vld [vmem:[#allocation5 + $0x18] sm:$0xff]  ;;  %v61_v1 = vld [vmem:[#allocation5 + $0x10] sm:$0xff]  ;;  %vm67_vm0 = vcmask 261120   ;;  %s264_s0 = smov 64  }
   0xf   :  { %83 = vmatpush.msra.mxu0 %v62_v0  ;;  %v60_v2 = vld [vmem:[#allocation5 + $0x8] sm:$0xff]  ;;  %v59_v3 = vld [vmem:[#allocation5] sm:$0xff]  ;;  %v58_v4 = vld [vmem:[#allocation2] sm:$0xff]  ;;  %s265_s2 = smov [#allocation8]   ;;  %s133_s4 = sshll.u32 %s301_s3, 4  ;;  %vm119_vm4 = vcmask 523264   ;;  %s134_s4 = int_to_ptr.hbm [resolvable:$true] %s133_s4 }
  0x10   :  { %v152_v5 = vld [vmem:[#allocation7] ss:$0 sm:$0xff]  ;;  %121 = vrot.lane.b32.xlu1 %v58_v4, %s264_s0  ;;  %v153_v23 = vld [vmem:[#allocation7 + $0x1] ss:$0 sm:$0xff]  ;;  %v154_v27 = vld [vmem:[#allocation7 + $0x2] ss:$0 sm:$0xff] }
  0x11   :  { %84 = vmatpush.msra.mxu0 %v61_v1  ;;  %s131_s28 = sshll.u32 %s265_s2, 4  ;;  %vm124_vm5 = vcmask 785920   ;;  %s132_s28 = int_to_ptr.vmem [resolvable:$true] %s131_s28 }
  0x13   :  { %85 = vmatpush.msra.mxu0 %v60_v2 }
  0x15   :  { %86 = vmatpush.msra.mxu0 %v59_v3 }
  0x16   :  { %144 = vmatmul.msk.f32.vlgmr.msra.gmra.mxu0 %vm67_vm0, %v58_v4 }
  0x82   :  { %v122_v30 = vpop.permute.xlu1 %121 }
  0x93   :  { %v88_v6 = vpop.f32.mrf.mxu0 }
  0x94   :  { %v89_v7 = vadd.f32 %v152_v5, %v88_v6 }
  0x96   :  { %91 = vadd.xlane.f32.xlu0 %v89_v7 }
 0x109   :  { %v92_v8 = vpop.xlane.xlu0 %91 }
 0x10a   :  { %v93_v9 = vmul.f32 0.015625, %v92_v8 }
 0x10c   :  { %v94_v10 = vsub.f32 %v89_v7, %v93_v9  ;;  %v98_v12 = vmul.f32 %v93_v9, %v93_v9 }
 0x10e   :  { %v95_v11 = vmul.f32 %v94_v10, %v94_v10  ;;  %v99_v13 = vmul.f32 64.0, %v98_v12 }
 0x110   :  { %96 = vadd.xlane.f32.xlu0 %v95_v11 }
 0x183   :  { %v97_v14 = vpop.xlane.xlu0 %96 }
 0x184   :  { %v100_v15 = vsub.f32 %v97_v14, %v99_v13 }
 0x186   :  { %v101_v16 = vmul.f32 0.015625, %v100_v15 }
 0x188   :  { %v102_v17 = vadd.f32 1e-05, %v101_v16 }
 0x18a   :  { %155 = vrsqrt.f32 %v102_v17  ;;  %vm109_vm2 = vweird.f32 %v102_v17 }
 0x190   :  { %v156_v18 = vpop.eup %155 }
 0x191   :  { %v104_v19 = vmul.f32 %v156_v18, %v102_v17  ;;  %vm110_vm1 = vweird.f32 %v156_v18 }
 0x192   :  { %vm111_vm3 = vmor %vm109_vm2, %vm110_vm1 }
 0x193   :  { %v105_v20 = vmul.f32 %v156_v18, %v104_v19 }
 0x195   :  { %v106_v21 = vmul.f32 0.5, %v105_v20 }
 0x197   :  { %v107_v22 = vsub.f32 1.5, %v106_v21 }
 0x199   :  { %v108_v24 = vmul.f32 %v156_v18, %v107_v22 }
 0x19b   :  { %v112_v25 = vsel %vm111_vm3, %v156_v18, %v108_v24 }
 0x19c   :  { %v114_v26 = vmul.f32 %v153_v23, %v112_v25 }
 0x19e   :  { %v115_v28 = vmul.f32 %v114_v26, %v94_v10 }
 0x1a0   :  { %v117_v29 = vadd.f32 %v154_v27, %v115_v28 }
 0x1a2   :  { %v118_v31 = vmax.f32 %v117_v29, 0.0 }
 0x1a4   :  { %120 = vst.msk [vmem:[#allocation8] sm:$0xff] %vm119_vm4, %v118_v31 }
 0x1a5   :  { %125 = vst.msk [vmem:[#allocation8] sm:$0xff] %vm124_vm5, %v122_v30 }
 0x1a6   :  { %136 = dma.vmem_to_hbm [thread:$0]  %s132_s28, 128, %s134_s4, [#allocation4]  }
 0x1a7   :  { %257 = dma.done.wait [#allocation4], 128  }
 0x1a8   :  { %258 = vsyncadd [#allocation4], 4294967168 }
 0x1a9   :  { %141 = vsyncpa [#allocation3], 1 }
 0x1aa   :  { %142 = vsyncpa [#allocation6], 1 }
 0x1ab   :  { %143 = vsyncpa [#allocation4], 1 }

// kernel: tpu_custom_call.1
= control target key start
LH: loop header
LB: loop body
LE: loop exit
PB: predicated region body
PF: predicated region fallthrough
CT: control target
= control target key end

     0   :  { %8 = vsyncpa [#allocation3], 0  ;;  %s298_s0 = inlined_call_operand.hbm [shape: f32[8,32], index: 0, kind: input, shape index: {}]   ;;  %s299_s1 = inlined_call_operand.hbm [shape: f32[32,128], index: 1, kind: input, shape index: {}]   ;;  %s300_s2 = inlined_call_operand.hbm [shape: f32[8,128], index: 2, kind: input, shape index: {}]   ;;  %s301_s3 = inlined_call_operand.hbm [shape: f32[8,96], index: 3, kind: output, shape index: {}]  }
   0x1   :  { %9 = vsyncpa [#allocation6], 0  ;;  %s26_s14 = sshll.u32 %s299_s1, 4  ;;  %s27_s14 = int_to_ptr.hbm [resolvable:$true] %s26_s14 }
   0x2   :  { %10 = vsyncpa [#allocation4], 0  ;;  %s259_s15 = smov [#allocation5]   ;;  %s16_s19 = sshll.u32 %s298_s0, 4  ;;  %s17_s19 = int_to_ptr.hbm [resolvable:$true] %s16_s19 }
   0x3   :  { %s28_s16 = sshll.u32 %s259_s15, 4  ;;  %s260_s20 = smov 128   ;;  %s29_s16 = int_to_ptr.vmem [resolvable:$true] %s28_s16 }
   0x4   :  { %s261_s21 = smov 8   ;;  %s262_s22 = smov [#allocation2]  }
   0x5   :  { %34 = dma.hbm_to_vmem [thread:$0]  %s27_s14, 512, %s29_s16, [#allocation6], %s260_s20, %s260_s20, %s261_s21  }
   0x6   :  { %s18_s23 = sshll.u32 %s262_s22, 4  ;;  %s40_s26 = sshll.u32 %s300_s2, 4  ;;  %s19_s23 = int_to_ptr.vmem [resolvable:$true] %s18_s23  ;;  %s41_s26 = int_to_ptr.hbm [resolvable:$true] %s40_s26 }
   0x7   :  { %21 = dma.hbm_to_vmem [thread:$0]  %s17_s19, 128, %s19_s23, [#allocation3]  }
   0x8   :  { %s263_s1 = smov [#allocation7]  }
   0x9   :  { %s42_s27 = sshll.u32 %s263_s1, 4  ;;  %s43_s27 = int_to_ptr.vmem [resolvable:$true] %s42_s27 }
   0xa   :  { %45 = dma.hbm_to_vmem [thread:$0]  %s41_s26, 128, %s43_s27, [#allocation6]  }
   0xb   :  { %253 = dma.done.wait [#allocation3], 128  }
   0xc   :  { %254 = vsyncadd [#allocation3], 4294967168 }
   0xd   :  { %255 = dma.done.wait [#allocation6], 640  }
   0xe   :  { %256 = vsyncadd [#allocation6], 4294966656  ;;  %v62_v0 = vld [vmem:[#allocation5 + $0x18] sm:$0xff]  ;;  %v61_v1 = vld [vmem:[#allocation5 + $0x10] sm:$0xff]  ;;  %vm67_vm0 = vcmask 261120   ;;  %s264_s0 = smov 64  }
   0xf   :  { %83 = vmatpush.msra.mxu0 %v62_v0  ;;  %v60_v2 = vld [vmem:[#allocation5 + $0x8] sm:$0xff]  ;;  %v59_v3 = vld [vmem:[#allocation5] sm:$0xff]  ;;  %v58_v4 = vld [vmem:[#allocation2] sm:$0xff]  ;;  %s265_s2 = smov [#allocation8]   ;;  %s133_s4 = sshll.u32 %s301_s3, 4  ;;  %vm119_vm4 = vcmask 523264   ;;  %s134_s4 = int_to_ptr.hbm [resolvable:$true] %s133_s4 }
  0x10   :  { %v152_v5 = vld [vmem:[#allocation7] ss:$0 sm:$0xff]  ;;  %121 = vrot.lane.b32.xlu1 %v58_v4, %s264_s0  ;;  %v153_v23 = vld [vmem:[#allocation7 + $0x1] ss:$0 sm:$0xff]  ;;  %v154_v27 = vld [vmem:[#allocation7 + $0x2] ss:$0 sm:$0xff] }
  0x11   :  { %84 = vmatpush.msra.mxu0 %v61_v1  ;;  %s131_s28 = sshll.u32 %s265_s2, 4  ;;  %vm124_vm5 = vcmask 785920   ;;  %s132_s28 = int_to_ptr.vmem [resolvable:$true] %s131_s28 }
  0x13   :  { %85 = vmatpush.msra.mxu0 %v60_v2 }
  0x15   :  { %86 = vmatpush.msra.mxu0 %v59_v3 }
  0x16   :  { %144 = vmatmul.msk.f32.vlgmr.msra.gmra.mxu0 %vm67_vm0, %v58_v4 }
  0x82   :  { %v122_v30 = vpop.permute.xlu1 %121 }
  0x93   :  { %v88_v6 = vpop.f32.mrf.mxu0 }
  0x94   :  { %v89_v7 = vadd.f32 %v152_v5, %v88_v6 }
  0x96   :  { %91 = vadd.xlane.f32.xlu0 %v89_v7 }
 0x109   :  { %v92_v8 = vpop.xlane.xlu0 %91 }
 0x10a   :  { %v93_v9 = vmul.f32 0.015625, %v92_v8 }
 0x10c   :  { %v94_v10 = vsub.f32 %v89_v7, %v93_v9  ;;  %v98_v12 = vmul.f32 %v93_v9, %v93_v9 }
 0x10e   :  { %v95_v11 = vmul.f32 %v94_v10, %v94_v10  ;;  %v99_v13 = vmul.f32 64.0, %v98_v12 }
 0x110   :  { %96 = vadd.xlane.f32.xlu0 %v95_v11 }
 0x183   :  { %v97_v14 = vpop.xlane.xlu0 %96 }
 0x184   :  { %v100_v15 = vsub.f32 %v97_v14, %v99_v13 }
 0x186   :  { %v101_v16 = vmul.f32 0.015625, %v100_v15 }
 0x188   :  { %v102_v17 = vadd.f32 1e-05, %v101_v16 }
 0x18a   :  { %155 = vrsqrt.f32 %v102_v17  ;;  %vm109_vm2 = vweird.f32 %v102_v17 }
 0x190   :  { %v156_v18 = vpop.eup %155 }
 0x191   :  { %v104_v19 = vmul.f32 %v156_v18, %v102_v17  ;;  %vm110_vm1 = vweird.f32 %v156_v18 }
 0x192   :  { %vm111_vm3 = vmor %vm109_vm2, %vm110_vm1 }
 0x193   :  { %v105_v20 = vmul.f32 %v156_v18, %v104_v19 }
 0x195   :  { %v106_v21 = vmul.f32 0.5, %v105_v20 }
 0x197   :  { %v107_v22 = vsub.f32 1.5, %v106_v21 }
 0x199   :  { %v108_v24 = vmul.f32 %v156_v18, %v107_v22 }
 0x19b   :  { %v112_v25 = vsel %vm111_vm3, %v156_v18, %v108_v24 }
 0x19c   :  { %v114_v26 = vmul.f32 %v153_v23, %v112_v25 }
 0x19e   :  { %v115_v28 = vmul.f32 %v114_v26, %v94_v10 }
 0x1a0   :  { %v117_v29 = vadd.f32 %v154_v27, %v115_v28 }
 0x1a2   :  { %v118_v31 = vmax.f32 %v117_v29, 0.0 }
 0x1a4   :  { %120 = vst.msk [vmem:[#allocation8] sm:$0xff] %vm119_vm4, %v118_v31 }
 0x1a5   :  { %125 = vst.msk [vmem:[#allocation8] sm:$0xff] %vm124_vm5, %v122_v30 }
 0x1a6   :  { %136 = dma.vmem_to_hbm [thread:$0]  %s132_s28, 128, %s134_s4, [#allocation4]  }
 0x1a7   :  { %257 = dma.done.wait [#allocation4], 128  }
 0x1a8   :  { %258 = vsyncadd [#allocation4], 4294967168 }
 0x1a9   :  { %141 = vsyncpa [#allocation3], 1 }
 0x1aa   :  { %142 = vsyncpa [#allocation6], 1 }
 0x1ab   :  { %143 = vsyncpa [#allocation4], 1 }

</bundles_post_ra>
